<compile_context>
chip_gen: v5e
topology: v5e:2x2
jax: 0.10.0
libtpu: 0.0.40
codegen_flags: <defaults>
</compile_context>

<pallas_src>
import functools

import jax
import jax.numpy as jnp
from jax.experimental import pallas as pl
from jax.experimental.pallas import tpu as pltpu


def _se_block_kernel(x_ref, w1t_ref, b1_ref, w2t_ref, b2_ref, o_ref, *, inv_hw):
    # x_ref: (TB, C, HWp) tile in the input's native dtype.
    x = x_ref[...]

    # Squeeze: global average pool over spatial positions.  Zeros in the
    # padded tail do not perturb the sum; divide by the *real* HW.
    y = jnp.sum(x, axis=2, dtype=jnp.float32) * inv_hw               # (TB, C)

    # Excitation MLP: Linear(C -> Cr) -> ReLU -> Linear(Cr -> C) -> Hardsigmoid
    h = jnp.dot(y, w1t_ref[...],
                preferred_element_type=jnp.float32) + b1_ref[...]    # (TB, Cr)
    h = jnp.maximum(h, 0.0)                                          # ReLU
    s = jnp.dot(h, w2t_ref[...],
                preferred_element_type=jnp.float32) + b2_ref[...]    # (TB, C)
    s = jnp.clip((s + 3.0) * (1.0 / 6.0), 0.0, 1.0)                  # Hardsigmoid

    # Scale in the native dtype; broadcast s along the lane (spatial) axis.
    o_ref[...] = x * s.astype(o_ref.dtype)[:, :, None]


# Scoped-VMEM limit: above the 16/32 MiB defaults, but safely under the
# 64 MiB physical VMEM of a v7x TensorCore.
_VMEM_LIMIT_BYTES = 48 * 1024 * 1024
# Budget for the pipelined blocks: 2 (double buffer) x 2 (in + out) x tile.
_TILE_BUDGET_BYTES = 32 * 1024 * 1024


def _choose_batch_tile(B, C, HWp, dtype_bytes):
    """Largest divisor of B whose (TB, C, HWp) tile fits the VMEM budget,
    keeping >= 2 grid steps when B >= 2 (megacore sharding on v7x)."""
    per_image = max(1, C * HWp * dtype_bytes)
    max_tb = max(1, _TILE_BUDGET_BYTES // (4 * per_image))
    if B >= 2:
        max_tb = min(max_tb, max(1, B // 2))
    tb = 1
    for d in range(1, B + 1):
        if B % d == 0 and d <= max_tb:
            tb = d
    return tb


def se_block_2d(x, w1, b1, w2, b2):
    """x: (B, C, H, W); w1: (Cr, C), b1: (Cr,), w2: (C, Cr), b2: (C,).

    Weight convention matches torch.nn.Linear: out = y @ W.T + b.
    """
    B, C, H, W = x.shape
    Cr = w1.shape[0]
    HW = H * W
    HWp = ((HW + 127) // 128) * 128  # lane-dense last dim (multiple of 128)

    x_flat = x.reshape(B, C, HW)
    if HWp != HW:
        # TODO(synk): for very non-aligned HW this costs an extra HBM pass on
        # input and output; acceptable for MobileNetV3 spatial sizes.
        x_flat = jnp.pad(x_flat, ((0, 0), (0, 0), (0, HWp - HW)))

    # Pre-transpose so the kernel does y @ W1.T and h @ W2.T directly.
    w1t = jnp.asarray(w1, jnp.float32).T          # (C, Cr)
    w2t = jnp.asarray(w2, jnp.float32).T          # (Cr, C)
    b1r = jnp.asarray(b1, jnp.float32).reshape(1, Cr)
    b2r = jnp.asarray(b2, jnp.float32).reshape(1, C)

    TB = _choose_batch_tile(B, C, HWp, x.dtype.itemsize)
    grid = (B // TB,)

    kernel = functools.partial(_se_block_kernel, inv_hw=float(1.0 / HW))

    out_flat = pl.pallas_call(
        kernel,
        out_shape=jax.ShapeDtypeStruct((B, C, HWp), x.dtype),
        grid_spec=pltpu.PrefetchScalarGridSpec(
            num_scalar_prefetch=0,
            grid=grid,
            in_specs=[
                pl.BlockSpec((TB, C, HWp), lambda b: (b, 0, 0)),    # x tile
                pl.BlockSpec((C, Cr), lambda b: (0, 0)),            # W1.T
                pl.BlockSpec((1, Cr), lambda b: (0, 0)),            # b1
                pl.BlockSpec((Cr, C), lambda b: (0, 0)),            # W2.T
                pl.BlockSpec((1, C), lambda b: (0, 0)),             # b2
            ],
            out_specs=pl.BlockSpec((TB, C, HWp), lambda b: (b, 0, 0)),
        ),
        compiler_params=pltpu.CompilerParams(
            dimension_semantics=("parallel",),
            vmem_limit_bytes=_VMEM_LIMIT_BYTES,
        ),
    )(x_flat, w1t, b1r, w2t, b2r)

    if HWp != HW:
        out_flat = out_flat[:, :, :HW]
    return out_flat.reshape(B, C, H, W)


def se_block_2d_ref(x, w1, b1, w2, b2):
    """Pure-JAX reference mirroring the PyTorch forward."""
    y = x.mean(axis=(2, 3))                               # (B, C)
    y = y @ w1.T + b1                                     # (B, Cr)
    y = jnp.maximum(y, 0.0)
    y = y @ w2.T + b2                                     # (B, C)
    y = jnp.clip((y + 3.0) / 6.0, 0.0, 1.0)               # hardsigmoid
    return x * y[:, :, None, None]


if __name__ == "__main__":
    B, C, H, W = 2, 32, 16, 16
    reduction = 8
    Cr = C // reduction

    key = jax.random.PRNGKey(0)
    kx, kw1, kb1, kw2, kb2 = jax.random.split(key, 5)

    x = jax.random.normal(kx, (B, C, H, W), dtype=jnp.float32)
    # Deterministic synthetic parameters (nn.Linear shapes).
    w1 = jax.random.normal(kw1, (Cr, C), dtype=jnp.float32) * 0.1
    b1 = jax.random.normal(kb1, (Cr,), dtype=jnp.float32) * 0.1
    w2 = jax.random.normal(kw2, (C, Cr), dtype=jnp.float32) * 0.1
    b2 = jax.random.normal(kb2, (C,), dtype=jnp.float32) * 0.1

    out = se_block_2d(x, w1, b1, w2, b2)
    out = jax.block_until_ready(out)

    ref = se_block_2d_ref(x, w1, b1, w2, b2)
    assert out.shape == (B, C, H, W)
    assert jnp.allclose(out, ref, atol=1e-5, rtol=1e-5)

    print("KERNEL_OK")
</pallas_src>

<mosaic_0001>
module attributes {stable_mosaic.version = 11 : i64} {
  func.func @_se_block_kernel(%arg0: i32, %arg1: memref<1x32x256xf32, #tpu.memory_space<vmem>>, %arg2: memref<32x4xf32, #tpu.memory_space<vmem>>, %arg3: memref<1x4xf32, #tpu.memory_space<vmem>>, %arg4: memref<4x32xf32, #tpu.memory_space<vmem>>, %arg5: memref<1x32xf32, #tpu.memory_space<vmem>>, %arg6: memref<1x32x256xf32, #tpu.memory_space<vmem>>) attributes {dimension_semantics = [#tpu.dimension_semantics<parallel>], iteration_bounds = array<i64: 2>, scalar_prefetch = 0 : i64, scratch_operands = 0 : i64, tpu.core_type = #tpu.core_type<tc>, window_params = [{transform_indices = @transform_0, window_bounds = array<i64: 1, 32, 256>}, {pipeline_mode = #tpu.pipeline_mode<synchronous>, transform_indices = @transform_1, window_bounds = array<i64: 32, 4>}, {pipeline_mode = #tpu.pipeline_mode<synchronous>, transform_indices = @transform_2, window_bounds = array<i64: 1, 4>}, {pipeline_mode = #tpu.pipeline_mode<synchronous>, transform_indices = @transform_3, window_bounds = array<i64: 4, 32>}, {pipeline_mode = #tpu.pipeline_mode<synchronous>, transform_indices = @transform_4, window_bounds = array<i64: 1, 32>}, {transform_indices = @transform_5, window_bounds = array<i64: 1, 32, 256>}]} {
    %c0 = arith.constant 0 : index
    %c0_0 = arith.constant 0 : index
    %c0_1 = arith.constant 0 : index
    %0 = vector.load %arg1[%c0, %c0_0, %c0_1] : memref<1x32x256xf32, #tpu.memory_space<vmem>>, vector<1x32x256xf32>
    %cst = arith.constant dense<0.000000e+00> : vector<1x32xf32>
    %1 = vector.multi_reduction <add>, %0, %cst [2] : vector<1x32x256xf32> to vector<1x32xf32>
    %cst_2 = arith.constant 3.906250e-03 : f32
    %2 = vector.broadcast %cst_2 : f32 to vector<1x32xf32>
    %3 = arith.mulf %1, %2 : vector<1x32xf32>
    %c0_3 = arith.constant 0 : index
    %c0_4 = arith.constant 0 : index
    %4 = vector.load %arg2[%c0_3, %c0_4] : memref<32x4xf32, #tpu.memory_space<vmem>>, vector<32x4xf32>
    %cst_5 = arith.constant dense<0.000000e+00> : vector<1x4xf32>
    %5 = tpu.matmul %3, %4, %cst_5 {dimension_numbers = #tpu.dot_dimension_numbers<[1], [0], [0], [1], [0, 0, 1, 1], [], []>} : vector<1x32xf32>, vector<32x4xf32>, vector<1x4xf32> -> vector<1x4xf32>
    %c0_6 = arith.constant 0 : index
    %c0_7 = arith.constant 0 : index
    %6 = vector.load %arg3[%c0_6, %c0_7] : memref<1x4xf32, #tpu.memory_space<vmem>>, vector<1x4xf32>
    %7 = arith.addf %5, %6 : vector<1x4xf32>
    %cst_8 = arith.constant 0.000000e+00 : f32
    %8 = vector.broadcast %cst_8 : f32 to vector<1x4xf32>
    %9 = arith.maximumf %7, %8 : vector<1x4xf32>
    %c0_9 = arith.constant 0 : index
    %c0_10 = arith.constant 0 : index
    %10 = vector.load %arg4[%c0_9, %c0_10] : memref<4x32xf32, #tpu.memory_space<vmem>>, vector<4x32xf32>
    %cst_11 = arith.constant dense<0.000000e+00> : vector<1x32xf32>
    %11 = tpu.matmul %9, %10, %cst_11 {dimension_numbers = #tpu.dot_dimension_numbers<[1], [0], [0], [1], [0, 0, 1, 1], [], []>} : vector<1x4xf32>, vector<4x32xf32>, vector<1x32xf32> -> vector<1x32xf32>
    %c0_12 = arith.constant 0 : index
    %c0_13 = arith.constant 0 : index
    %12 = vector.load %arg5[%c0_12, %c0_13] : memref<1x32xf32, #tpu.memory_space<vmem>>, vector<1x32xf32>
    %13 = arith.addf %11, %12 : vector<1x32xf32>
    %cst_14 = arith.constant 3.000000e+00 : f32
    %14 = vector.broadcast %cst_14 : f32 to vector<1x32xf32>
    %15 = arith.addf %13, %14 : vector<1x32xf32>
    %cst_15 = arith.constant 0.166666672 : f32
    %16 = vector.broadcast %cst_15 : f32 to vector<1x32xf32>
    %17 = arith.mulf %15, %16 : vector<1x32xf32>
    %cst_16 = arith.constant 0.000000e+00 : f32
    %cst_17 = arith.constant 1.000000e+00 : f32
    %18 = vector.broadcast %cst_16 : f32 to vector<1x32xf32>
    %19 = arith.maximumf %18, %17 : vector<1x32xf32>
    %20 = vector.broadcast %cst_17 : f32 to vector<1x32xf32>
    %21 = arith.minimumf %20, %19 : vector<1x32xf32>
    %22 = vector.shape_cast %21 : vector<1x32xf32> to vector<1x32x1xf32>
    %23 = vector.broadcast %22 : vector<1x32x1xf32> to vector<1x32x256xf32>
    %24 = arith.mulf %0, %23 : vector<1x32x256xf32>
    %c0_18 = arith.constant 0 : index
    %c0_19 = arith.constant 0 : index
    %c0_20 = arith.constant 0 : index
    %25 = vector.load %arg6[%c0_18, %c0_19, %c0_20] : memref<1x32x256xf32, #tpu.memory_space<vmem>>, vector<1x32x256xf32>
    tpu.vector_store %arg6[%c0_18, %c0_19, %c0_20], %24 {strides = array<i32>} : memref<1x32x256xf32, #tpu.memory_space<vmem>>, vector<1x32x256xf32>,
    return
  }
  func.func @transform_0(%arg0: i32) -> (i32, i32, i32) {
    %c0_i32 = arith.constant 0 : i32
    %c0_i32_0 = arith.constant 0 : i32
    %c0_i32_1 = arith.constant 0 : i32
    return %arg0, %c0_i32, %c0_i32_0 : i32, i32, i32
  }
  func.func @transform_1(%arg0: i32) -> (i32, i32) {
    %c0_i32 = arith.constant 0 : i32
    %c0_i32_0 = arith.constant 0 : i32
    %c0_i32_1 = arith.constant 0 : i32
    return %c0_i32, %c0_i32_0 : i32, i32
  }
  func.func @transform_2(%arg0: i32) -> (i32, i32) {
    %c0_i32 = arith.constant 0 : i32
    %c0_i32_0 = arith.constant 0 : i32
    %c0_i32_1 = arith.constant 0 : i32
    return %c0_i32, %c0_i32_0 : i32, i32
  }
  func.func @transform_3(%arg0: i32) -> (i32, i32) {
    %c0_i32 = arith.constant 0 : i32
    %c0_i32_0 = arith.constant 0 : i32
    %c0_i32_1 = arith.constant 0 : i32
    return %c0_i32, %c0_i32_0 : i32, i32
  }
  func.func @transform_4(%arg0: i32) -> (i32, i32) {
    %c0_i32 = arith.constant 0 : i32
    %c0_i32_0 = arith.constant 0 : i32
    %c0_i32_1 = arith.constant 0 : i32
    return %c0_i32, %c0_i32_0 : i32, i32
  }
  func.func @transform_5(%arg0: i32) -> (i32, i32, i32) {
    %c0_i32 = arith.constant 0 : i32
    %c0_i32_0 = arith.constant 0 : i32
    %c0_i32_1 = arith.constant 0 : i32
    return %arg0, %c0_i32, %c0_i32_0 : i32, i32, i32
  }
}

</mosaic_0001>

<bundles_post_ra>
// kernel: tpu_custom_call.1
= control target key start
LH: loop header
LB: loop body
LE: loop exit
PB: predicated region body
PF: predicated region fallthrough
CT: control target
= control target key end

     0   :  { %10 = vsyncpa [#allocation3], 0  ;;  %s871_s0 = inlined_call_operand.hbm [shape: f32[2,32,256], index: 0, kind: input, shape index: {}]   ;;  %s872_s1 = inlined_call_operand.vmem [shape: f32[32,4], index: 1, kind: input, shape index: {}]   ;;  %s873_s2 = inlined_call_operand.vmem [shape: f32[1,4], index: 2, kind: input, shape index: {}]   ;;  %s874_s3 = inlined_call_operand.vmem [shape: f32[4,32], index: 3, kind: input, shape index: {}]   ;;  %s875_s4 = inlined_call_operand.vmem [shape: f32[1,32], index: 4, kind: input, shape index: {}]   ;;  %s876_s5 = inlined_call_operand.hbm [shape: f32[2,32,256], index: 5, kind: output, shape index: {}]  }
   0x1   :  { %12 = vsyncpa [#allocation3 + $0x1], 0 }
   0x2   :  { %13 = vsyncpa [#allocation4], 0 }
   0x3   :  { %15 = vsyncpa [#allocation4 + $0x1], 0  ;;  %s687_s18 = smov 0   ;;  %s689_s19 = smov 0  }
   0x4   :  { %s691_s20 = smov 0   ;;  %s693_s21 = smov 0  }
   0x5 LB: > { %s708_s22 = sadd.s32 4294967295, %s651_s21   ;;  %s481_s23 = sadd.s32 4294967294, %s651_s21   ;;  %s651_s21 = sphi %s693_s21, %s886_s21   ;;  %s647_s20 = sphi %s691_s20, %s885_s20   ;;  %s643_s19 = sphi %s689_s19, %s884_s19   ;;  %s639_s18 = sphi %s687_s18, %s883_s18  }
   0x6   : > { %s712_s24 = sadd.s32 1, %s651_s21   ;;  %s28_s25 = sadd.s32 1, %s647_s20 }
   0x7   : > { %s25_s26 = ssub.s32 %s651_s21, %s712_s24  ;;  %p35_p0 = scmp.ne.s32.totalorder %s647_s20, %s643_s19 }
   0x8   : > { %p26_p1 = scmp.eq.s32.totalorder %s25_s26, 0  ;;  %p36_p2 = scmp.eq.s32.totalorder %s651_s21, 0 }
   0x9   : > { %p41_p3 = scmp.ne.s32.totalorder %s643_s19, %s639_s18  ;;  %p42_p4 = scmp.eq.s32.totalorder %s708_s22, 0 }
   0xa   : > { %s724_s27 = scalar_select %p26_p1, %s647_s20, %s28_s25  }
   0xb   : > { %p726_p5 = por %p36_p2, %p35_p0  ;;  %p730_p6 = por %p42_p4, %p41_p3 }
   0xc   : > { %p149_p7 = scmp.eq.s32.totalorder %s708_s22, 1  ;;  %p155_p8 = scmp.eq.s32.totalorder %s481_s23, 1 }
   0xd   : > { %p512_p10 = scmp.lt.s32.totalorder %s651_s21, 2  ;;  %s187_s7 = sand.u32 1, %s647_s20  }
   0xe   : > { %p737_p11 = por %p149_p7, %p35_p0  ;;  %p741_p12 = por %p155_p8, %p41_p3 }
   0xf   : > { %s498_s8 = sshll.u32 %s651_s21, 6  ;;  %s484_s9 = sshll.u32 %s187_s7, 6 }
  0x10   : > { %s196_s12 = scalar_lea.hbm %s871_s0, %s498_s8  ;;  %s191_s14 = scalar_lea.vmem [#allocation2], %s484_s9 }
  0x11   : > { %s197_s13 = sshll.u32 %s196_s12, 4  ;;  %s199_s15 = sshll.u32 %s191_s14, 4  ;;  %s198_s13 = int_to_ptr.hbm [resolvable:$true] %s197_s13  ;;  %s200_s15 = int_to_ptr.vmem [resolvable:$true] %s199_s15 }
  0x12   : > { %p752_p13 = pnand %p512_p10, %p726_p5  ;;  %p487_p0 = scmp.ge.s32.totalorder %s651_s21, 1 }
  0x13   : > { %p207_p1 = scmp.lt.s32.totalorder %s651_s21, 3  ;;  %s188_s17 = scalar_lea.sflag [#allocation3], %s187_s7 }
  0x14   : > { %s555_s23 = sshra.s32 %s198_s13, 4  ;;  %p559_p3 = pneg %p752_p13  ;;  %s556_s23 = int_to_ptr.hbm [resolvable:$true] %s555_s23 }
  0x15   : > { %s557_s25 = scalar_lea.hbm %s556_s23, 64  ;;  %s562_s28 = scalar_lea.hbm %s871_s0, 128 }
  0x16   : > { %p558_p2 = scmp.ne.s32.totalorder %s556_s23, %s557_s25  ;;  %p563_p5 = scmp.lt.s32.totalorder %s556_s23, %s871_s0 }
  0x17   : > { %p564_p8 = scmp.lt.s32.totalorder %s562_s28, %s557_s25 }
  0x18   : > { %p560_p4 = pnand %p559_p3, %p558_p2 }
  0x19   : > { %p565_p10 = por %p564_p8, %p563_p5 }
  0x1a   : > { %p561_p7 = pneg %p560_p4 }
  0x1c   : > { %p566_p9 = pnand %p565_p10, %p561_p7 }
  0x1e   : > { %569 = shalt.err (!%p566_p9)
}
  0x1f   : > { %s653_s7 = smov 256   ;;  %s654_s11 = smov 16  }
  0x20   : > { %507 = dma.hbm_to_vmem [thread:$0]  (!%p752_p13), %s198_s13, 1024, %s200_s15, %s188_s17, %s653_s7, %s653_s7, %s654_s11  }
  0x21   : > { %p208_p2 = pnand %p487_p0, %p207_p1 }
  0x22   : > { %s773_s12 = sand.u32 (!%p208_p2), 1, %s643_s19  }
  0x23   : > { %211 = sbr.rel (%p208_p2) target bundleno = 567 (0x237), region = 40  ;;  %s488_s14 = sshll.u32 (!%p208_p2), %s773_s12, 6 }
  0x24   : > { %s214_s23 = scalar_lea.sflag (!%p208_p2), [#allocation3], %s773_s12  ;;  %s217_s25 = scalar_lea.vmem (!%p208_p2), [#allocation2], %s488_s14 }
  0x28   : > { %630 = dma.done.wait (%p730_p6), %s214_s23, 1024  }
  0x29   : > { %632 = vsyncadd (%p730_p6), %s214_s23, 4294966272  ;;  %v783_v0 = vld [vmem:[%s217_s25] sm:$0xff]  ;;  %v785_v1 = vld [vmem:[%s217_s25 + $0x8] sm:$0xff]  ;;  %v278_v16 = vlaneseq  ;;  %vm283_vm0 = vcmask 130112   ;;  %vm287_vm1 = vcmask 195712   ;;  %vm291_vm2 = vcmask 261312  }
  0x2a   : > { %v787_v2 = vld [vmem:[%s217_s25 + $0x20] sm:$0xff]  ;;  %v253_v3 = vadd.f32 %v785_v1, %v783_v0  ;;  %v791_v4 = vld [vmem:[%s217_s25 + $0x28] sm:$0xff]  ;;  %v795_v6 = vld [vmem:[%s217_s25 + $0x10] sm:$0xff]  ;;  %vm293_vm3 = vcmask 261120   ;;  %vm323_vm4 = vcmask 1043456   ;;  %vm319_vm5 = vcmask 31744  }
  0x2b   : > { %v259_v5 = vadd.f32 %v791_v4, %v787_v2  ;;  %v797_v7 = vld [vmem:[%s217_s25 + $0x18] sm:$0xff]  ;;  %v799_v8 = vld [vmem:[%s217_s25 + $0x30] sm:$0xff]  ;;  %v270_v14 = vld [vmem:[%s872_s1 + $0x8] sm:$0xff]  ;;  %v279_v19 = vand.u32 127, %v278_v16  ;;  %v353_v41 = vshrl.u32 %v278_v16, 7  ;;  %s244_s29 = scalar_lea.vmem [#allocation5], %s488_s14 }
  0x2c   : > { %254 = vadd.xlane.f32.xlu0 %v253_v3  ;;  %v801_v9 = vld [vmem:[%s217_s25 + $0x38] sm:$0xff]  ;;  %v256_v10 = vadd.f32 %v797_v7, %v795_v6  ;;  %v271_v13 = vld [vmem:[%s872_s1 + $0x10] sm:$0xff]  ;;  %v269_v15 = vld [vmem:[%s872_s1] sm:$0xff]  ;;  %s499_s13 = sshll.u32 %s708_s22, 6  ;;  %s405_s26 = sshll.u32 %s244_s29, 4  ;;  %s406_s26 = int_to_ptr.vmem [resolvable:$true] %s405_s26 }
  0x2d   : > { %260 = vadd.xlane.f32.xlu1 %v259_v5  ;;  %v262_v11 = vadd.f32 %v801_v9, %v799_v8  ;;  %v272_v12 = vld [vmem:[%s872_s1 + $0x18] sm:$0xff]  ;;  %v281_v21 = vadd.s32 4294967288, %v279_v19  ;;  %v285_v22 = vadd.s32 4294967280, %v279_v19  ;;  %v289_v25 = vadd.s32 4294967272, %v279_v19  ;;  %v317_v36 = vld [vmem:[%s874_s3] sm:$0xf]  ;;  %550 = vset.pattern.permute.xlu2 %v353_v41  ;;  %s404_s17 = scalar_lea.hbm %s876_s5, %s499_s13 }
  0x2e   : > { %308 = vmatpush.msra.mxu0 %v272_v12  ;;  %491 = vmatpush.msk.msra.mxu1 %vm323_vm4, %v317_v36  ;;  %v273_v37 = vld [vmem:[%s873_s2] sm:$0x1]  ;;  %v372_v42 = vadd.s32 24, %v353_v41  ;;  %v366_v43 = vadd.s32 16, %v353_v41  ;;  %v360_v52 = vadd.s32 8, %v353_v41  ;;  %s407_s8 = sshll.u32 %s404_s17, 4  ;;  %s408_s8 = int_to_ptr.hbm [resolvable:$true] %s407_s8 }
  0x2f   : > { %v318_v44 = vld [vmem:[%s875_s4] sm:$0x1]  ;;  %s393_s22 = scalar_lea.sflag [#allocation4], %s773_s12  ;;  %s599_s14 = sshra.s32 %s408_s8, 4  ;;  %s600_s14 = int_to_ptr.hbm [resolvable:$true] %s599_s14 }
  0x30   : > { %309 = vmatpush.msra.mxu0 %v271_v13  ;;  %553 = vset.pattern.permute.xlu1 %v372_v42  ;;  %s601_s28 = scalar_lea.hbm %s600_s14, 64  ;;  %s605_s7 = scalar_lea.hbm %s876_s5, 128 }
  0x31   : > { %552 = vset.pattern.permute.xlu0 %v366_v43  ;;  %p602_p6 = scmp.ne.s32.totalorder %s600_s14, %s601_s28  ;;  %p606_p0 = scmp.lt.s32.totalorder %s600_s14, %s876_s5 }
  0x32   : > { %310 = vmatpush.msra.mxu0 %v270_v14  ;;  %p607_p1 = scmp.lt.s32.totalorder %s605_s7, %s601_s28 }
  0x33   : > { %p603_p9 = pnand %p602_p6, %p737_p11 }
  0x34   : > { %257 = vadd.xlane.f32.xlu0 %v256_v10  ;;  %311 = vmatpush.msra.mxu0 %v269_v15  ;;  %p608_p3 = por %p607_p1, %p606_p0 }
  0x35   : > { %263 = vadd.xlane.f32.xlu1 %v262_v11  ;;  %p604_p13 = pneg %p603_p9 }
  0x37   : > { %p609_p4 = pnand %p608_p3, %p604_p13 }
  0x9f   : > { %v255_v17 = vpop.xlane.xlu0 %254 }
  0xa0   : > { %v261_v18 = vpop.xlane.xlu1 %260  ;;  %v265_v20 = vmul.f32 0.00390625, %v255_v17 }
  0xa1   : > { %v267_v23 = vmul.f32 0.00390625, %v261_v18 }
  0xa2   : > { %v280_v29 = vperm.slane %v265_v20, %v279_v19 }
  0xa3   : > { %v286_v31 = vperm.slane %v267_v23, %v285_v22 }
  0xa7   : > { %v258_v24 = vpop.xlane.xlu0 %257 }
  0xa8   : > { %v266_v26 = vmul.f32 0.00390625, %v258_v24  ;;  %v264_v27 = vpop.xlane.xlu1 %263 }
  0xa9   : > { %v268_v28 = vmul.f32 0.00390625, %v264_v27 }
  0xaa   : > { %v282_v30 = vperm.slane %v266_v26, %v281_v21 }
  0xab   : > { %v290_v32 = vperm.slane %v268_v28, %v289_v25 }
  0xac   : > { %v284_v33 = vsel %vm283_vm0, %v282_v30, %v280_v29 }
  0xad   : > { %v288_v34 = vsel %vm287_vm1, %v286_v31, %v284_v33 }
  0xae   : > { %v292_v35 = vsel %vm291_vm2, %v290_v32, %v288_v34 }
  0xaf   : > { %490 = vmatmul.msk.f32.vlgmr.msra.gmra.mxu0 %vm293_vm3, %v292_v35 }
 0x12c   : > { %v313_v38 = vpop.f32.mrf.mxu0 }
 0x12d   : > { %v314_v39 = vadd.f32 %v313_v38, %v273_v37 }
 0x12f   : > { %v316_v40 = vmax.f32 %v314_v39, 0.0 }
 0x131   : > { %492 = vmatmul.msk.f32.vlgmr.msra.gmra.mxu1 %vm319_vm5, %v316_v40 }
 0x1ae   : > { %v344_v45 = vpop.f32.mrf.mxu1 }
 0x1af   : > { %v345_v46 = vadd.f32 %v344_v45, %v318_v44 }
 0x1b1   : > { %v347_v47 = vadd.f32 3.0, %v345_v46 }
 0x1b3   : > { %v348_v48 = vmul.f32 0.16666667, %v347_v47 }
 0x1b5   : > { %v349_v49 = vmax.f32 %v348_v48, 0.0 }
 0x1b7   : > { %v350_v50 = vmin.f32 %v349_v49, 1.0 }
 0x1b9   : > { %v351_v51 = vperm.slane %v350_v50, 0 }
 0x1bb   : > { %374 = vperm.xlu1 %553, %v351_v51   ;;  %368 = vperm.xlu0 %552, %v351_v51  }
 0x1bc   : > { %356 = vperm.xlu2 %550, %v351_v51  }
 0x1c3   : > { %554 = vset.pattern.permute.xlu0 %v372_v42 }
 0x1c4   : > { %551 = vset.pattern.permute.xlu2 %v360_v52 }
 0x1cc   : > { %362 = vperm.xlu2 %551, %v351_v51  }
 0x216   : > { %v357_v53 = vpop.permute.xlu2 %356 }
 0x217   : > { %v376_v54 = vmul.f32 %v357_v53, %v783_v0  ;;  %v377_v55 = vmul.f32 %v357_v53, %v785_v1 }
 0x219   : > { %384 = vst [vmem:[%s244_s29] sm:$0xff] %v376_v54 }
 0x21a   : > { %385 = vst [vmem:[%s244_s29 + $0x8] sm:$0xff] %v377_v55 }
 0x226   : > { %v363_v56 = vpop.permute.xlu2 %362 }
 0x227   : > { %v378_v57 = vmul.f32 %v363_v56, %v795_v6  ;;  %v379_v58 = vmul.f32 %v363_v56, %v797_v7 }
 0x229   : > { %386 = vst [vmem:[%s244_s29 + $0x10] sm:$0xff] %v378_v57 }
 0x22a   : > { %387 = vst [vmem:[%s244_s29 + $0x18] sm:$0xff] %v379_v58 }
 0x22d   : > { %v375_v59 = vpop.permute.xlu1 %374  ;;  %v369_v60 = vpop.permute.xlu0 %368 }
 0x22e   : > { %v382_v61 = vmul.f32 %v375_v59, %v799_v8  ;;  %v383_v62 = vmul.f32 %v375_v59, %v801_v9  ;;  %v380_v63 = vmul.f32 %v369_v60, %v787_v2  ;;  %v381_v0 = vmul.f32 %v369_v60, %v791_v4 }
 0x230   : > { %390 = vst [vmem:[%s244_s29 + $0x30] sm:$0xff] %v382_v61 }
 0x231   : > { %391 = vst [vmem:[%s244_s29 + $0x38] sm:$0xff] %v383_v62 }
 0x232   : > { %388 = vst [vmem:[%s244_s29 + $0x20] sm:$0xff] %v380_v63 }
 0x233   : > { %389 = vst [vmem:[%s244_s29 + $0x28] sm:$0xff] %v381_v0 }
 0x234   : > { %612 = shalt.err (!%p609_p4)
}
 0x235   : > { %s655_s12 = smov 256   ;;  %s656_s25 = smov 16  }
 0x236   : > { %502 = dma.vmem_to_hbm [thread:$0]  (%p737_p11), %s406_s26, 1024, %s408_s8, %s393_s22, %s655_s12, %s655_s12, %s656_s25  }
 0x237 PF: > { %s422_s29 = sand.u32 1, %s639_s18   ;;  %p882_p7 = scmp.ge.s32.totalorder %s651_s21, 2 }
 0x238   : > { %s423_s13 = scalar_lea.sflag [#allocation4], %s422_s29 }
 0x239   : > { %p509_p5 = pnand %p882_p7, %p741_p12 }
 0x23b   : > { %p510_p8 = pneg %p509_p5 }
 0x23d   : > { %634 = dma.done.wait (%p510_p8), %s423_s13, 1024  }
 0x23e   : > { %636 = vsyncadd (%p510_p8), %s423_s13, 4294966272  ;;  %p18_p10 = scmp.ge.s32.totalorder %s712_s24, 4   ;;  %s883_s18 = smov %s643_s19 }
 0x23f   : > { %s884_s19 = smov %s647_s20  ;;  %s885_s20 = smov %s724_s27 }
 0x240   : > { %s886_s21 = smov %s712_s24  ;;  %20 = sbr.rel (!%p18_p10) target bundleno = 5 (0x5), region = 85 }
 0x245   :  { %429 = vsyncpa [#allocation3], 1 }
 0x246   :  { %431 = vsyncpa [#allocation3 + $0x1], 1 }
 0x247   :  { %432 = vsyncpa [#allocation4], 1 }
 0x248   :  { %434 = vsyncpa [#allocation4 + $0x1], 1 }

</bundles_post_ra>
